<compile_context>
chip_gen: v5e
topology: v5e:2x2
jax: 0.10.0
libtpu: 0.0.40
codegen_flags: <defaults>
</compile_context>

<pallas_src>
import functools

import jax
import jax.numpy as jnp
from jax.experimental import pallas as pl
from jax.experimental.pallas import tpu as pltpu


def _rmsnorm_kernel(x_ref, scale_ref, o_ref, *, d, eps):
    # x_ref: (tile_rows, d), scale_ref: (1, d), o_ref: (tile_rows, d)
    x = x_ref[...].astype(jnp.float32)
    scale = scale_ref[...].astype(jnp.float32)
    sumsq = jnp.sum(x * x, axis=-1, keepdims=True)        # (tile_rows, 1)
    rms_x = jnp.sqrt(sumsq) * (float(d) ** -0.5)
    inv = pl.reciprocal(rms_x + eps, approx=False)        # exact: mem-bound, numerics are free
    o_ref[...] = (x * inv * scale).astype(o_ref.dtype)


def _sublane_multiple(itemsize):
    if itemsize >= 4:
        return 8
    if itemsize == 2:
        return 16
    return 32


def _vmem_capacity_bytes():
    try:
        return int(pltpu.get_tpu_info().vmem_capacity_bytes)
    except Exception:
        return 64 * 1024 * 1024  # conservative: v7x per-TensorCore VMEM


def rmsnorm_pallas(x, scale, eps=1e-8, tile_rows=None, vmem_limit_bytes=None):
    """x: [..., d], scale: [d] -> same shape/dtype as x."""
    orig_shape = x.shape
    d = x.shape[-1]
    x2 = x.reshape(-1, d)
    rows = x2.shape[0]
    scale2 = scale.reshape(1, d)

    itemsize = jnp.dtype(x.dtype).itemsize
    sub = _sublane_multiple(itemsize)

    capacity = _vmem_capacity_bytes()
    budget = int(0.35 * capacity)                 # tile auto-sizing budget
    if vmem_limit_bytes is None:
        vmem_limit_bytes = int(0.6 * capacity)    # leaves headroom for Mosaic scratch

    # Per-row VMEM footprint: double-buffered in + out blocks + ~2 f32 temporaries.
    per_row = d * (4 * itemsize + 2 * 4)
    fixed = 4 * d * itemsize                      # double-buffered scale block (tiny)

    if tile_rows is None:
        if sub * per_row + fixed > budget:
            # TODO(synk): two-pass d-split Pallas kernel (sumsq reduce over d tiles,
            # then a normalize pass) for feature dims too large for VMEM.
            xf = x.astype(jnp.float32)
            rms = jnp.sqrt(jnp.sum(xf * xf, axis=-1, keepdims=True)) * (float(d) ** -0.5)
            return (scale.astype(jnp.float32) * (xf / (rms + eps))).astype(x.dtype)
        target_block_bytes = 8 * 1024 * 1024      # ~85% HBM roofline territory
        tr = min(target_block_bytes // (d * itemsize), (budget - fixed) // per_row)
        tile_rows = max(sub, (tr // sub) * sub)

    if rows <= tile_rows:
        tile_rows = rows                          # single full-extent block
    else:
        tile_rows = max(sub, (tile_rows // sub) * sub)

    # v7x has 2 TensorCores; the 'parallel' grid axis is sharded across them.
    # Ensure at least 2 tiles whenever the row count allows it (neutral on v5e/v6e).
    if rows >= 2 * sub and -(-rows // tile_rows) < 2:
        half = (rows + 1) // 2
        tile_rows = ((half + sub - 1) // sub) * sub

    n_tiles = -(-rows // tile_rows)

    kernel = functools.partial(_rmsnorm_kernel, d=d, eps=eps)

    out = pl.pallas_call(
        kernel,
        out_shape=jax.ShapeDtypeStruct((rows, d), x.dtype),
        grid_spec=pltpu.PrefetchScalarGridSpec(
            num_scalar_prefetch=0,
            grid=(n_tiles,),
            in_specs=[
                pl.BlockSpec((tile_rows, d), lambda i: (i, 0)),
                pl.BlockSpec((1, d), lambda i: (0, 0)),
            ],
            out_specs=pl.BlockSpec((tile_rows, d), lambda i: (i, 0)),
        ),
        compiler_params=pltpu.CompilerParams(
            dimension_semantics=("parallel",),
            vmem_limit_bytes=vmem_limit_bytes,
        ),
    )(x2, scale2)

    return out.reshape(orig_shape)


def rmsnorm_ref(x, scale, eps=1e-8):
    d = x.shape[-1]
    xf = x.astype(jnp.float32)
    norm_x = jnp.linalg.norm(xf, axis=-1, keepdims=True)
    rms_x = norm_x * (d ** -0.5)
    x_normed = xf / (rms_x + eps)
    return (scale.astype(jnp.float32) * x_normed).astype(x.dtype)


if __name__ == "__main__":
    key = jax.random.PRNGKey(0)
    k1, k2, k3, k4 = jax.random.split(key, 4)

    # Case 1: aligned shapes matching module usage [batch, seq, d]; exercises the
    # >=2-tile (megacore) path since rows=16.
    batch, seq, d = 2, 8, 128
    x = jax.random.normal(k1, (batch, seq, d), dtype=jnp.float32)
    scale = 1.0 + 0.1 * jax.random.normal(k4, (d,), dtype=jnp.float32)
    out = rmsnorm_pallas(x, scale, eps=1e-8)
    jax.block_until_ready(out)
    ref = rmsnorm_ref(x, scale, eps=1e-8)
    assert out.shape == x.shape
    assert jnp.allclose(out, ref, atol=1e-5, rtol=1e-5), "mismatch (aligned)"

    # Case 2: ragged feature dim + rows < sublane multiple -> single full-extent block.
    batch2, seq2, d2 = 2, 7, 96
    x2 = jax.random.normal(k2, (batch2, seq2, d2), dtype=jnp.float32)
    scale2 = jnp.ones((d2,), dtype=jnp.float32)
    out2 = rmsnorm_pallas(x2, scale2, eps=1e-8)
    jax.block_until_ready(out2)
    ref2 = rmsnorm_ref(x2, scale2, eps=1e-8)
    assert out2.shape == x2.shape
    assert jnp.allclose(out2, ref2, atol=1e-5, rtol=1e-5), "mismatch (ragged, 1 tile)"

    # Case 3: rows=21 -> 2 tiles with a partial last block (no host padding/slicing).
    batch3, seq3, d3 = 3, 7, 64
    x3 = jax.random.normal(k3, (batch3, seq3, d3), dtype=jnp.float32)
    scale3 = jnp.ones((d3,), dtype=jnp.float32)
    out3 = rmsnorm_pallas(x3, scale3, eps=1e-8)
    jax.block_until_ready(out3)
    ref3 = rmsnorm_ref(x3, scale3, eps=1e-8)
    assert out3.shape == x3.shape
    assert jnp.allclose(out3, ref3, atol=1e-5, rtol=1e-5), "mismatch (partial last tile)"

    print("KERNEL_OK")
</pallas_src>

<mosaic_0001>
module attributes {stable_mosaic.version = 11 : i64} {
  func.func @_rmsnorm_kernel(%arg0: i32, %arg1: memref<8x128xf32, #tpu.memory_space<vmem>>, %arg2: memref<1x128xf32, #tpu.memory_space<vmem>>, %arg3: memref<8x128xf32, #tpu.memory_space<vmem>>) attributes {dimension_semantics = [#tpu.dimension_semantics<parallel>], iteration_bounds = array<i64: 2>, scalar_prefetch = 0 : i64, scratch_operands = 0 : i64, tpu.core_type = #tpu.core_type<tc>, window_params = [{transform_indices = @transform_0, window_bounds = array<i64: 8, 128>}, {pipeline_mode = #tpu.pipeline_mode<synchronous>, transform_indices = @transform_1, window_bounds = array<i64: 1, 128>}, {transform_indices = @transform_2, window_bounds = array<i64: 8, 128>}]} {
    %c0 = arith.constant 0 : index
    %c0_0 = arith.constant 0 : index
    %0 = vector.load %arg1[%c0, %c0_0] : memref<8x128xf32, #tpu.memory_space<vmem>>, vector<8x128xf32>
    %c0_1 = arith.constant 0 : index
    %c0_2 = arith.constant 0 : index
    %1 = vector.load %arg2[%c0_1, %c0_2] : memref<1x128xf32, #tpu.memory_space<vmem>>, vector<1x128xf32>
    %2 = arith.mulf %0, %0 : vector<8x128xf32>
    %cst = arith.constant dense<0.000000e+00> : vector<8xf32>
    %3 = vector.multi_reduction <add>, %2, %cst [1] : vector<8x128xf32> to vector<8xf32>
    %4 = vector.shape_cast %3 : vector<8xf32> to vector<8x1xf32>
    %5 = math.sqrt %4 : vector<8x1xf32>
    %cst_3 = arith.constant 0.0883883461 : f32
    %6 = vector.broadcast %cst_3 : f32 to vector<8x1xf32>
    %7 = arith.mulf %5, %6 : vector<8x1xf32>
    %cst_4 = arith.constant 9.99999993E-9 : f32
    %8 = vector.broadcast %cst_4 : f32 to vector<8x1xf32>
    %9 = arith.addf %7, %8 : vector<8x1xf32>
    %10 = tpu.reciprocal %9 : vector<8x1xf32> -> vector<8x1xf32>
    %11 = vector.broadcast %10 : vector<8x1xf32> to vector<8x128xf32>
    %12 = arith.mulf %0, %11 : vector<8x128xf32>
    %13 = vector.broadcast %1 : vector<1x128xf32> to vector<8x128xf32>
    %14 = arith.mulf %12, %13 : vector<8x128xf32>
    %c0_5 = arith.constant 0 : index
    %c0_6 = arith.constant 0 : index
    %15 = vector.load %arg3[%c0_5, %c0_6] : memref<8x128xf32, #tpu.memory_space<vmem>>, vector<8x128xf32>
    tpu.vector_store %arg3[%c0_5, %c0_6], %14 {strides = array<i32>} : memref<8x128xf32, #tpu.memory_space<vmem>>, vector<8x128xf32>,
    return
  }
  func.func @transform_0(%arg0: i32) -> (i32, i32) {
    %c0_i32 = arith.constant 0 : i32
    %c0_i32_0 = arith.constant 0 : i32
    return %arg0, %c0_i32 : i32, i32
  }
  func.func @transform_1(%arg0: i32) -> (i32, i32) {
    %c0_i32 = arith.constant 0 : i32
    %c0_i32_0 = arith.constant 0 : i32
    %c0_i32_1 = arith.constant 0 : i32
    return %c0_i32, %c0_i32_0 : i32, i32
  }
  func.func @transform_2(%arg0: i32) -> (i32, i32) {
    %c0_i32 = arith.constant 0 : i32
    %c0_i32_0 = arith.constant 0 : i32
    return %arg0, %c0_i32 : i32, i32
  }
}

</mosaic_0001>

<bundles_post_ra>
// kernel: tpu_custom_call.1
= control target key start
LH: loop header
LB: loop body
LE: loop exit
PB: predicated region body
PF: predicated region fallthrough
CT: control target
= control target key end

     0   :  { %7 = vsyncpa [#allocation3], 0  ;;  %s677_s0 = inlined_call_operand.hbm [shape: f32[16,128], index: 0, kind: input, shape index: {}]   ;;  %s678_s1 = inlined_call_operand.hbm [shape: f32[1,128], index: 1, kind: input, shape index: {}]   ;;  %s679_s2 = inlined_call_operand.hbm [shape: f32[16,128], index: 2, kind: output, shape index: {}]  }
   0x1   :  { %9 = vsyncpa [#allocation3 + $0x1], 0 }
   0x2   :  { %10 = vsyncpa [#allocation6], 0 }
   0x3   :  { %11 = vsyncpa [#allocation4], 0 }
   0x4   :  { %13 = vsyncpa [#allocation4 + $0x1], 0  ;;  %s535_s9 = smov 0   ;;  %s537_s10 = smov 0  }
   0x5   :  { %s539_s11 = smov 0   ;;  %s541_s12 = smov 0  }
   0x6 LB: > { %s556_s13 = sadd.s32 4294967295, %s517_s12   ;;  %s311_s14 = sadd.s32 4294967294, %s517_s12   ;;  %s517_s12 = sphi %s541_s12, %s689_s12   ;;  %s513_s11 = sphi %s539_s11, %s688_s11   ;;  %s509_s10 = sphi %s537_s10, %s687_s10   ;;  %s505_s9 = sphi %s535_s9, %s686_s9  }
   0x7   : > { %p39_p0 = scmp.ne.s32.totalorder %s509_s10, %s505_s9  ;;  %p40_p1 = scmp.eq.s32.totalorder %s556_s13, 0 }
   0x8   : > { %p84_p2 = scmp.eq.s32.totalorder %s556_s13, 1  ;;  %p90_p3 = scmp.eq.s32.totalorder %s311_s14, 1 }
   0x9   : > { %p565_p4 = por %p40_p1, %p39_p0  ;;  %p312_p5 = scmp.ge.s32.totalorder %s517_s12, 1 }
   0xa   : > { %p570_p6 = por %p90_p3, %p39_p0  ;;  %p97_p7 = scmp.lt.s32.totalorder %s517_s12, 3 }
   0xb   : > { %s109_s19 = sshll.u32 %s678_s1, 4  ;;  %s519_s21 = smov [#allocation5]   ;;  %s110_s19 = int_to_ptr.hbm [resolvable:$true] %s109_s19 }
   0xc   : > { %p578_p8 = pnand %p312_p5, %p97_p7  ;;  %s111_s22 = sshll.u32 %s519_s21, 4  ;;  %s112_s22 = int_to_ptr.vmem [resolvable:$true] %s111_s22 }
   0xd   : > { %s588_s23 = sadd.s32 1, %s517_s12   ;;  %s26_s24 = sadd.s32 1, %s513_s11 }
   0xe   : > { %p333_p10 = pneg %p578_p8  ;;  %s23_s25 = ssub.s32 %s517_s12, %s588_s23 }
   0xf   : > { %p24_p12 = scmp.eq.s32.totalorder %s23_s25, 0  ;;  %p33_p13 = scmp.ne.s32.totalorder %s513_s11, %s509_s10 }
  0x10   : > { %p334_p11 = pnand %p333_p10, %p40_p1  ;;  %p34_p0 = scmp.eq.s32.totalorder %s517_s12, 0 }
  0x11   : > { %s597_s26 = scalar_select %p24_p12, %s513_s11, %s26_s24  }
  0x12   : > { %336 = dma.hbm_to_vmem [thread:$0]  (!%p334_p11), %s110_s19, 16, %s112_s22, [#allocation6]  }
  0x13   : > { %p601_p3 = por %p84_p2, %p33_p13  ;;  %p346_p5 = scmp.lt.s32.totalorder %s517_s12, 2 }
  0x14   : > { %s122_s28 = sand.u32 1, %s513_s11   ;;  %s316_s29 = sshll.u32 %s517_s12, 3 }
  0x15   : > { %p35_p7 = por %p34_p0, %p33_p13  ;;  %s315_s30 = sshll.u32 %s122_s28, 3 }
  0x16   : > { %s130_s5 = scalar_lea.hbm %s677_s0, %s316_s29  ;;  %s126_s7 = scalar_lea.vmem [#allocation2], %s315_s30 }
  0x17   : > { %s132_s6 = sshll.u32 %s130_s5, 4  ;;  %s134_s8 = sshll.u32 %s126_s7, 4  ;;  %s133_s6 = int_to_ptr.hbm [resolvable:$true] %s132_s6  ;;  %s135_s8 = int_to_ptr.vmem [resolvable:$true] %s134_s8 }
  0x18   : > { %p611_p10 = pnand %p346_p5, %p35_p7  ;;  %s123_s17 = scalar_lea.sflag [#allocation3], %s122_s28 }
  0x19   : > { %s417_s18 = sshra.s32 %s133_s6, 4  ;;  %s424_s24 = scalar_lea.hbm %s677_s0, 16  ;;  %s418_s18 = int_to_ptr.hbm [resolvable:$true] %s417_s18 }
  0x1a   : > { %s419_s19 = scalar_lea.hbm %s418_s18, 8  ;;  %p421_p11 = pneg %p611_p10 }
  0x1b   : > { %p420_p2 = scmp.ne.s32.totalorder %s418_s18, %s419_s19  ;;  %p425_p0 = scmp.lt.s32.totalorder %s418_s18, %s677_s0 }
  0x1c   : > { %p426_p5 = scmp.lt.s32.totalorder %s424_s24, %s419_s19 }
  0x1d   : > { %p422_p12 = pnand %p421_p11, %p420_p2 }
  0x1e   : > { %p427_p7 = por %p426_p5, %p425_p0 }
  0x1f   : > { %p423_p13 = pneg %p422_p12 }
  0x21   : > { %p428_p9 = pnand %p427_p7, %p423_p13 }
  0x23   : > { %431 = shalt.err (!%p428_p9)
}
  0x24   : > { %340 = dma.hbm_to_vmem [thread:$0]  (!%p611_p10), %s133_s6, 128, %s135_s8, %s123_s17  }
  0x25   : > { %143 = sbr.rel (%p578_p8) target bundleno = 213 (0xd5), region = 28  ;;  %s628_s28 = sand.u32 (!%p578_p8), 1, %s509_s10  }
  0x26   : > { %s318_s30 = sshll.u32 (!%p578_p8), %s628_s28, 3  ;;  %s146_s3 = scalar_lea.sflag (!%p578_p8), [#allocation3], %s628_s28 }
  0x27   : > { %s149_s4 = scalar_lea.vmem (!%p578_p8), [#allocation2], %s318_s30 }
  0x2a   : > { %492 = dma.done.wait (%p565_p4), %s146_s3, 128  }
  0x2b   : > { %494 = vsyncadd (%p565_p4), %s146_s3, 4294967168 }
  0x2c   : > { %496 = dma.done.wait (%p40_p1), [#allocation6], 16  }
  0x2d   : > { %498 = vsyncadd (%p40_p1), [#allocation6], 4294967280  ;;  %v176_v0 = vld [vmem:[%s149_s4] sm:$0xff]  ;;  %s322_s15 = sshll.u32 %s556_s13, 3  ;;  %v382_v24 = vld [vmem:[#allocation5] ss:$0 sm:$0xff] }
  0x2e   : > { %v178_v1 = vmul.f32 %v176_v0, %v176_v0  ;;  %s226_s6 = scalar_lea.hbm %s679_s2, %s322_s15  ;;  %s175_s7 = scalar_lea.vmem [#allocation7], %s318_s30 }
  0x2f   : > { %s228_s13 = sshll.u32 %s175_s7, 4  ;;  %s230_s8 = sshll.u32 %s226_s6, 4  ;;  %s229_s13 = int_to_ptr.vmem [resolvable:$true] %s228_s13  ;;  %s231_s8 = int_to_ptr.hbm [resolvable:$true] %s230_s8 }
  0x30   : > { %179 = vadd.xlane.f32.xlu0 %v178_v1  ;;  %s216_s14 = scalar_lea.sflag [#allocation4], %s628_s28  ;;  %s461_s17 = sshra.s32 %s231_s8, 4  ;;  %s462_s17 = int_to_ptr.hbm [resolvable:$true] %s461_s17 }
  0x31   : > { %s463_s18 = scalar_lea.hbm %s462_s17, 8  ;;  %s467_s22 = scalar_lea.hbm %s679_s2, 16 }
  0x32   : > { %p464_p1 = scmp.ne.s32.totalorder %s462_s17, %s463_s18  ;;  %p468_p9 = scmp.lt.s32.totalorder %s462_s17, %s679_s2 }
  0x33   : > { %p469_p10 = scmp.lt.s32.totalorder %s467_s22, %s463_s18 }
  0x34   : > { %p465_p4 = pnand %p464_p1, %p601_p3 }
  0x35   : > { %p470_p2 = por %p469_p10, %p468_p9 }
  0x36   : > { %p466_p8 = pneg %p465_p4 }
  0x38   : > { %p471_p11 = pnand %p470_p2, %p466_p8 }
  0xa3   : > { %v180_v2 = vpop.xlane.xlu0 %179 }
  0xa4   : > { %383 = vrsqrt.f32 %v180_v2  ;;  %vm188_vm0 = vcmp.eq.f32.partialorder %v180_v2, inf  ;;  %v191_v10 = vand.u32 2147483648, %v180_v2  ;;  %vm190_vm1 = vcmp.eq.f32.partialorder %v180_v2, 0.0 }
  0xaa   : > { %v384_v3 = vpop.eup %383 }
  0xab   : > { %v182_v4 = vmul.f32 %v384_v3, %v180_v2 }
  0xad   : > { %v183_v5 = vmul.f32 %v384_v3, %v182_v4 }
  0xaf   : > { %v184_v6 = vmul.f32 0.5, %v183_v5 }
  0xb1   : > { %v185_v7 = vsub.f32 1.5, %v184_v6 }
  0xb3   : > { %v186_v8 = vmul.f32 %v384_v3, %v185_v7 }
  0xb5   : > { %v187_v9 = vmul.f32 %v186_v8, %v180_v2 }
  0xb7   : > { %v189_v11 = vsel %vm188_vm0, %v180_v2, %v187_v9 }
  0xb8   : > { %v192_v12 = vsel %vm190_vm1, %v191_v10, %v189_v11 }
  0xb9   : > { %v193_v13 = vmul.f32 0.088388346, %v192_v12 }
  0xbb   : > { %v194_v14 = vadd.f32 1e-08, %v193_v13 }
  0xbd   : > { %385 = vrcp.f32 %v194_v14  ;;  %v206_v18 = vand.u32 2147483648, %v194_v14  ;;  %v204_v20 = vand.u32 2147483647, %v194_v14  ;;  %vm200_vm3 = vweird.f32 %v194_v14 }
  0xbf   : > { %v207_v22 = vor.u32 1.1754944e-38, %v206_v18  ;;  %vm205_vm5 = vcmp.eq.f32.partialorder %v204_v20, 8.507059e+37 }
  0xc3   : > { %v386_v15 = vpop.eup %385 }
  0xc4   : > { %v196_v16 = vmul.f32 %v386_v15, %v194_v14  ;;  %vm201_vm2 = vweird.f32 %v386_v15 }
  0xc5   : > { %vm202_vm4 = vmor %vm200_vm3, %vm201_vm2 }
  0xc6   : > { %v197_v17 = vsub.f32 1.0, %v196_v16 }
  0xc8   : > { %v198_v19 = vmul.f32 %v386_v15, %v197_v17 }
  0xca   : > { %v199_v21 = vadd.f32 %v386_v15, %v198_v19 }
  0xcc   : > { %v203_v23 = vsel %vm202_vm4, %v386_v15, %v199_v21 }
  0xcd   : > { %v208_v25 = vsel %vm205_vm5, %v207_v22, %v203_v23 }
  0xce   : > { %v209_v26 = vmul.f32 %v208_v25, %v176_v0 }
  0xd0   : > { %v213_v27 = vmul.f32 %v382_v24, %v209_v26 }
  0xd2   : > { %214 = vst [vmem:[%s175_s7] sm:$0xff] %v213_v27 }
  0xd3   : > { %474 = shalt.err (!%p471_p11)
}
  0xd4   : > { %331 = dma.vmem_to_hbm [thread:$0]  (%p601_p3), %s229_s13, 128, %s231_s8, %s216_s14  }
  0xd5 PF: > { %s242_s29 = sand.u32 1, %s505_s9   ;;  %p685_p12 = scmp.ge.s32.totalorder %s517_s12, 2 }
  0xd6   : > { %s243_s28 = scalar_lea.sflag [#allocation4], %s242_s29 }
  0xd7   : > { %p342_p13 = pnand %p685_p12, %p570_p6 }
  0xd9   : > { %p343_p0 = pneg %p342_p13 }
  0xdb   : > { %500 = dma.done.wait (%p343_p0), %s243_s28, 128  }
  0xdc   : > { %502 = vsyncadd (%p343_p0), %s243_s28, 4294967168  ;;  %p16_p5 = scmp.ge.s32.totalorder %s588_s23, 4   ;;  %s686_s9 = smov %s509_s10 }
  0xdd   : > { %s687_s10 = smov %s513_s11  ;;  %s688_s11 = smov %s597_s26 }
  0xde   : > { %s689_s12 = smov %s588_s23  ;;  %18 = sbr.rel (!%p16_p5) target bundleno = 6 (0x6), region = 77 }
  0xe3   :  { %249 = vsyncpa [#allocation3], 1 }
  0xe4   :  { %251 = vsyncpa [#allocation3 + $0x1], 1 }
  0xe5   :  { %252 = vsyncpa [#allocation6], 1 }
  0xe6   :  { %253 = vsyncpa [#allocation4], 1 }
  0xe7   :  { %255 = vsyncpa [#allocation4 + $0x1], 1 }

</bundles_post_ra>
